<compile_context>
chip_gen: v5e
topology: v5e:2x2
jax: 0.10.0
libtpu: 0.0.40
codegen_flags: <defaults>
</compile_context>

<pallas_src>
import jax
import jax.numpy as jnp
from jax.experimental import pallas as pl
from jax.experimental.pallas import tpu as pltpu

K = 5      # conv kernel width
PAD = 2    # conv padding ("same" for K=5)


def resblock_kernel(x_ref, w1_ref, b1_ref, w2_ref, b2_ref, o_ref, hp_ref):
    # x_ref : (B, L, C)        f32   input block (channels-last)
    # w*_ref: (K*C, C)         bf16  im2col weights: row k*C+ci = torch_w[:, ci, k]
    # b*_ref: (1, C)           f32
    # o_ref : (B, L, C)        f32
    # hp_ref: (B, L+2*PAD, C)  bf16  scratch with a PAD-row zero halo each side
    B, L, C = x_ref.shape
    KC = K * C

    # --- ReLU(x) into the zero-halo scratch. relu(0) = 0, so the zero halo
    #     exactly emulates Conv1d's zero padding. Only the 2*PAD boundary rows
    #     are zeroed (two small static-slice stores). ---
    hp_ref[:, :PAD, :] = jnp.zeros((B, PAD, C), hp_ref.dtype)
    hp_ref[:, PAD + L:, :] = jnp.zeros((B, PAD, C), hp_ref.dtype)
    hp_ref[:, PAD:PAD + L, :] = jnp.maximum(x_ref[...], 0.0).astype(hp_ref.dtype)

    def conv(w_ref, b_ref):
        # im2col: a[b, i, k*C + ci] = h[b, i + k, ci]
        # -> one MXU matmul (B*L, K*C) @ (K*C, C) with f32 accumulation.
        h = hp_ref[...]
        a = jnp.concatenate([h[:, k:k + L, :] for k in range(K)], axis=-1)
        y = jnp.dot(a.reshape(B * L, KC), w_ref[...],
                    preferred_element_type=jnp.float32)
        return y + b_ref[...]                          # (B*L, C) f32

    y1 = conv(w1_ref, b1_ref)

    # ReLU, write back into the same scratch: the PAD halo rows are still zero,
    # which is exactly conv2's zero padding (no extra masking needed).
    hp_ref[:, PAD:PAD + L, :] = (
        jnp.maximum(y1, 0.0).astype(hp_ref.dtype).reshape(B, L, C))

    y2 = conv(w2_ref, b2_ref).reshape(B, L, C)

    # Residual in f32.
    # TODO(synk): with C=32 this store uses 32/128 lanes (masked vst); a
    # lane-dense (B, L*C) output would need an in-kernel minor-dim reshape.
    o_ref[...] = (x_ref[...] + 0.3 * y2).astype(o_ref.dtype)


def resblock_pallas(x_ncl, w1, b1, w2, b2, *, batch_tile=None):
    """ResBlock forward. x_ncl: (N, C, L) f32 (PyTorch NCL layout) -> (N, C, L)."""
    N, C, L = x_ncl.shape
    if batch_tile is None:
        # Fold enough sequences per step that the matmul M-dim (batch_tile*L)
        # approaches ~256 rows, but keep >= 2 grid steps so both v7x
        # TensorCores get a "parallel" block.
        batch_tile = max(1, min(pl.cdiv(256, L), pl.cdiv(N, 2)))
    n_steps = pl.cdiv(N, batch_tile)
    n_padded = n_steps * batch_tile

    # Channels-last. NOTE: no full-array jnp.pad of x here -- the conv halos
    # are built inside the kernel in VMEM (saves a full HBM pass over x).
    x = jnp.transpose(x_ncl, (0, 2, 1)).astype(jnp.float32)        # (N, L, C)
    if n_padded != N:
        x = jnp.pad(x, ((0, n_padded - N), (0, 0), (0, 0)))        # pad batch only

    # im2col weight matrices (K*C_in, C_out); bf16 for the MXU.
    w1_m = jnp.transpose(w1, (2, 1, 0)).reshape(K * C, C).astype(jnp.bfloat16)
    w2_m = jnp.transpose(w2, (2, 1, 0)).reshape(K * C, C).astype(jnp.bfloat16)
    b1_r = b1.reshape(1, C).astype(jnp.float32)
    b2_r = b2.reshape(1, C).astype(jnp.float32)

    out = pl.pallas_call(
        resblock_kernel,
        out_shape=jax.ShapeDtypeStruct((n_padded, L, C), jnp.float32),
        grid_spec=pltpu.PrefetchScalarGridSpec(
            num_scalar_prefetch=0,
            grid=(n_steps,),
            in_specs=[
                pl.BlockSpec((batch_tile, L, C), lambda n: (n, 0, 0)),
                # Constant index_map: weights/bias fetched once and reused.
                pl.BlockSpec((K * C, C), lambda n: (0, 0)),
                pl.BlockSpec((1, C), lambda n: (0, 0)),
                pl.BlockSpec((K * C, C), lambda n: (0, 0)),
                pl.BlockSpec((1, C), lambda n: (0, 0)),
            ],
            out_specs=pl.BlockSpec((batch_tile, L, C), lambda n: (n, 0, 0)),
            scratch_shapes=[
                pltpu.VMEM((batch_tile, L + 2 * PAD, C), jnp.bfloat16),
            ],
        ),
        compiler_params=pltpu.CompilerParams(
            dimension_semantics=("parallel",),
        ),
    )(x, w1_m, b1_r, w2_m, b2_r)

    out = out[:N]
    return jnp.transpose(out, (0, 2, 1))               # back to (N, C, L)


def resblock_ref(x, w1, b1, w2, b2):
    """Pure-JAX reference matching torch semantics (NCL, OIH weights), f32."""
    dn = jax.lax.conv_dimension_numbers(x.shape, w1.shape, ('NCH', 'OIH', 'NCH'))
    h = jax.nn.relu(x)
    y1 = jax.lax.conv_general_dilated(
        h, w1, (1,), [(PAD, PAD)], dimension_numbers=dn,
        precision=jax.lax.Precision.HIGHEST) + b1[None, :, None]
    h2 = jax.nn.relu(y1)
    y2 = jax.lax.conv_general_dilated(
        h2, w2, (1,), [(PAD, PAD)], dimension_numbers=dn,
        precision=jax.lax.Precision.HIGHEST) + b2[None, :, None]
    return x + 0.3 * y2


if __name__ == "__main__":
    N, D_MODEL, L = 4, 32, 16   # batch, d_model (channels), sequence length

    key = jax.random.PRNGKey(0)
    kx, kw1, kb1, kw2, kb2 = jax.random.split(key, 5)

    x = jax.random.normal(kx, (N, D_MODEL, L), dtype=jnp.float32)
    # nn.Conv1d(d_model, d_model, 5) weights: (out_ch, in_ch, K)
    w1 = 0.1 * jax.random.normal(kw1, (D_MODEL, D_MODEL, K), dtype=jnp.float32)
    b1 = 0.1 * jax.random.normal(kb1, (D_MODEL,), dtype=jnp.float32)
    w2 = 0.1 * jax.random.normal(kw2, (D_MODEL, D_MODEL, K), dtype=jnp.float32)
    b2 = 0.1 * jax.random.normal(kb2, (D_MODEL,), dtype=jnp.float32)

    out = jax.block_until_ready(resblock_pallas(x, w1, b1, w2, b2))
    ref = jax.block_until_ready(resblock_ref(x, w1, b1, w2, b2))

    assert out.shape == (N, D_MODEL, L)
    # bf16 MXU operands (f32 accumulate) vs f32 HIGHEST-precision reference.
    assert jnp.allclose(out, ref, atol=2e-2, rtol=2e-2), "mismatch vs reference"

    print("KERNEL_OK")
</pallas_src>

<mosaic_0001>
module attributes {stable_mosaic.version = 11 : i64} {
  func.func @resblock_kernel(%arg0: i32, %arg1: memref<2x16x32xf32, #tpu.memory_space<vmem>>, %arg2: memref<160x32xbf16, #tpu.memory_space<vmem>>, %arg3: memref<1x32xf32, #tpu.memory_space<vmem>>, %arg4: memref<160x32xbf16, #tpu.memory_space<vmem>>, %arg5: memref<1x32xf32, #tpu.memory_space<vmem>>, %arg6: memref<2x16x32xf32, #tpu.memory_space<vmem>>, %arg7: memref<2x20x32xbf16, #tpu.memory_space<vmem>>) attributes {dimension_semantics = [#tpu.dimension_semantics<parallel>], iteration_bounds = array<i64: 2>, scalar_prefetch = 0 : i64, scratch_operands = 1 : i64, tpu.core_type = #tpu.core_type<tc>, window_params = [{transform_indices = @transform_0, window_bounds = array<i64: 2, 16, 32>}, {pipeline_mode = #tpu.pipeline_mode<synchronous>, transform_indices = @transform_1, window_bounds = array<i64: 160, 32>}, {pipeline_mode = #tpu.pipeline_mode<synchronous>, transform_indices = @transform_2, window_bounds = array<i64: 1, 32>}, {pipeline_mode = #tpu.pipeline_mode<synchronous>, transform_indices = @transform_3, window_bounds = array<i64: 160, 32>}, {pipeline_mode = #tpu.pipeline_mode<synchronous>, transform_indices = @transform_4, window_bounds = array<i64: 1, 32>}, {transform_indices = @transform_5, window_bounds = array<i64: 2, 16, 32>}]} {
    %cst = arith.constant 0.000000e+00 : bf16
    %0 = vector.broadcast %cst : bf16 to vector<2x2x32xbf16>
    %c0 = arith.constant 0 : index
    %c0_0 = arith.constant 0 : index
    %c0_1 = arith.constant 0 : index
    %1 = vector.load %arg7[%c0, %c0_0, %c0_1] : memref<2x20x32xbf16, #tpu.memory_space<vmem>>, vector<2x2x32xbf16>
    tpu.vector_store %arg7[%c0, %c0_0, %c0_1], %0 {strides = array<i32>} : memref<2x20x32xbf16, #tpu.memory_space<vmem>>, vector<2x2x32xbf16>,
    %cst_2 = arith.constant 0.000000e+00 : bf16
    %2 = vector.broadcast %cst_2 : bf16 to vector<2x2x32xbf16>
    %c0_3 = arith.constant 0 : index
    %c18 = arith.constant 18 : index
    %c0_4 = arith.constant 0 : index
    %3 = vector.load %arg7[%c0_3, %c18, %c0_4] : memref<2x20x32xbf16, #tpu.memory_space<vmem>>, vector<2x2x32xbf16>
    tpu.vector_store %arg7[%c0_3, %c18, %c0_4], %2 {strides = array<i32>} : memref<2x20x32xbf16, #tpu.memory_space<vmem>>, vector<2x2x32xbf16>,
    %c0_5 = arith.constant 0 : index
    %c0_6 = arith.constant 0 : index
    %c0_7 = arith.constant 0 : index
    %4 = vector.load %arg1[%c0_5, %c0_6, %c0_7] : memref<2x16x32xf32, #tpu.memory_space<vmem>>, vector<2x16x32xf32>
    %cst_8 = arith.constant 0.000000e+00 : f32
    %5 = vector.broadcast %cst_8 : f32 to vector<2x16x32xf32>
    %6 = arith.maximumf %4, %5 : vector<2x16x32xf32>
    %7 = arith.truncf %6 : vector<2x16x32xf32> to vector<2x16x32xbf16>
    %c0_9 = arith.constant 0 : index
    %c2 = arith.constant 2 : index
    %c0_10 = arith.constant 0 : index
    %8 = vector.load %arg7[%c0_9, %c2, %c0_10] : memref<2x20x32xbf16, #tpu.memory_space<vmem>>, vector<2x16x32xbf16>
    tpu.vector_store %arg7[%c0_9, %c2, %c0_10], %7 {strides = array<i32>} : memref<2x20x32xbf16, #tpu.memory_space<vmem>>, vector<2x16x32xbf16>,
    %c0_11 = arith.constant 0 : index
    %c0_12 = arith.constant 0 : index
    %c0_13 = arith.constant 0 : index
    %9 = vector.load %arg7[%c0_11, %c0_12, %c0_13] : memref<2x20x32xbf16, #tpu.memory_space<vmem>>, vector<2x20x32xbf16>
    %10 = vector.extract_strided_slice %9 {offsets = [0, 0, 0], sizes = [2, 16, 32], strides = [1, 1, 1]} : vector<2x20x32xbf16> to vector<2x16x32xbf16>
    %11 = vector.extract_strided_slice %9 {offsets = [0, 1, 0], sizes = [2, 16, 32], strides = [1, 1, 1]} : vector<2x20x32xbf16> to vector<2x16x32xbf16>
    %12 = vector.extract_strided_slice %9 {offsets = [0, 2, 0], sizes = [2, 16, 32], strides = [1, 1, 1]} : vector<2x20x32xbf16> to vector<2x16x32xbf16>
    %13 = vector.extract_strided_slice %9 {offsets = [0, 3, 0], sizes = [2, 16, 32], strides = [1, 1, 1]} : vector<2x20x32xbf16> to vector<2x16x32xbf16>
    %14 = vector.extract_strided_slice %9 {offsets = [0, 4, 0], sizes = [2, 16, 32], strides = [1, 1, 1]} : vector<2x20x32xbf16> to vector<2x16x32xbf16>
    %15 = tpu.concatenate %10, %11, %12, %13, %14 in 2 : vector<2x16x32xbf16>, vector<2x16x32xbf16>, vector<2x16x32xbf16>, vector<2x16x32xbf16>, vector<2x16x32xbf16> -> vector<2x16x160xbf16>
    %16 = vector.shape_cast %15 : vector<2x16x160xbf16> to vector<32x160xbf16>
    %c0_14 = arith.constant 0 : index
    %c0_15 = arith.constant 0 : index
    %17 = vector.load %arg2[%c0_14, %c0_15] : memref<160x32xbf16, #tpu.memory_space<vmem>>, vector<160x32xbf16>
    %cst_16 = arith.constant dense<0.000000e+00> : vector<32x32xf32>
    %18 = tpu.matmul %16, %17, %cst_16 {dimension_numbers = #tpu.dot_dimension_numbers<[1], [0], [0], [1], [0, 0, 1, 1], [], []>} : vector<32x160xbf16>, vector<160x32xbf16>, vector<32x32xf32> -> vector<32x32xf32>
    %c0_17 = arith.constant 0 : index
    %c0_18 = arith.constant 0 : index
    %19 = vector.load %arg3[%c0_17, %c0_18] : memref<1x32xf32, #tpu.memory_space<vmem>>, vector<1x32xf32>
    %20 = vector.broadcast %19 : vector<1x32xf32> to vector<32x32xf32>
    %21 = arith.addf %18, %20 : vector<32x32xf32>
    %cst_19 = arith.constant 0.000000e+00 : f32
    %22 = vector.broadcast %cst_19 : f32 to vector<32x32xf32>
    %23 = arith.maximumf %21, %22 : vector<32x32xf32>
    %24 = arith.truncf %23 : vector<32x32xf32> to vector<32x32xbf16>
    %25 = vector.shape_cast %24 : vector<32x32xbf16> to vector<2x16x32xbf16>
    %c0_20 = arith.constant 0 : index
    %c2_21 = arith.constant 2 : index
    %c0_22 = arith.constant 0 : index
    %26 = vector.load %arg7[%c0_20, %c2_21, %c0_22] : memref<2x20x32xbf16, #tpu.memory_space<vmem>>, vector<2x16x32xbf16>
    tpu.vector_store %arg7[%c0_20, %c2_21, %c0_22], %25 {strides = array<i32>} : memref<2x20x32xbf16, #tpu.memory_space<vmem>>, vector<2x16x32xbf16>,
    %c0_23 = arith.constant 0 : index
    %c0_24 = arith.constant 0 : index
    %c0_25 = arith.constant 0 : index
    %27 = vector.load %arg7[%c0_23, %c0_24, %c0_25] : memref<2x20x32xbf16, #tpu.memory_space<vmem>>, vector<2x20x32xbf16>
    %28 = vector.extract_strided_slice %27 {offsets = [0, 0, 0], sizes = [2, 16, 32], strides = [1, 1, 1]} : vector<2x20x32xbf16> to vector<2x16x32xbf16>
    %29 = vector.extract_strided_slice %27 {offsets = [0, 1, 0], sizes = [2, 16, 32], strides = [1, 1, 1]} : vector<2x20x32xbf16> to vector<2x16x32xbf16>
    %30 = vector.extract_strided_slice %27 {offsets = [0, 2, 0], sizes = [2, 16, 32], strides = [1, 1, 1]} : vector<2x20x32xbf16> to vector<2x16x32xbf16>
    %31 = vector.extract_strided_slice %27 {offsets = [0, 3, 0], sizes = [2, 16, 32], strides = [1, 1, 1]} : vector<2x20x32xbf16> to vector<2x16x32xbf16>
    %32 = vector.extract_strided_slice %27 {offsets = [0, 4, 0], sizes = [2, 16, 32], strides = [1, 1, 1]} : vector<2x20x32xbf16> to vector<2x16x32xbf16>
    %33 = tpu.concatenate %28, %29, %30, %31, %32 in 2 : vector<2x16x32xbf16>, vector<2x16x32xbf16>, vector<2x16x32xbf16>, vector<2x16x32xbf16>, vector<2x16x32xbf16> -> vector<2x16x160xbf16>
    %34 = vector.shape_cast %33 : vector<2x16x160xbf16> to vector<32x160xbf16>
    %c0_26 = arith.constant 0 : index
    %c0_27 = arith.constant 0 : index
    %35 = vector.load %arg4[%c0_26, %c0_27] : memref<160x32xbf16, #tpu.memory_space<vmem>>, vector<160x32xbf16>
    %cst_28 = arith.constant dense<0.000000e+00> : vector<32x32xf32>
    %36 = tpu.matmul %34, %35, %cst_28 {dimension_numbers = #tpu.dot_dimension_numbers<[1], [0], [0], [1], [0, 0, 1, 1], [], []>} : vector<32x160xbf16>, vector<160x32xbf16>, vector<32x32xf32> -> vector<32x32xf32>
    %c0_29 = arith.constant 0 : index
    %c0_30 = arith.constant 0 : index
    %37 = vector.load %arg5[%c0_29, %c0_30] : memref<1x32xf32, #tpu.memory_space<vmem>>, vector<1x32xf32>
    %38 = vector.broadcast %37 : vector<1x32xf32> to vector<32x32xf32>
    %39 = arith.addf %36, %38 : vector<32x32xf32>
    %40 = vector.shape_cast %39 : vector<32x32xf32> to vector<2x16x32xf32>
    %c0_31 = arith.constant 0 : index
    %c0_32 = arith.constant 0 : index
    %c0_33 = arith.constant 0 : index
    %41 = vector.load %arg1[%c0_31, %c0_32, %c0_33] : memref<2x16x32xf32, #tpu.memory_space<vmem>>, vector<2x16x32xf32>
    %cst_34 = arith.constant 3.000000e-01 : f32
    %42 = vector.broadcast %cst_34 : f32 to vector<2x16x32xf32>
    %43 = arith.mulf %42, %40 : vector<2x16x32xf32>
    %44 = arith.addf %41, %43 : vector<2x16x32xf32>
    %c0_35 = arith.constant 0 : index
    %c0_36 = arith.constant 0 : index
    %c0_37 = arith.constant 0 : index
    %45 = vector.load %arg6[%c0_35, %c0_36, %c0_37] : memref<2x16x32xf32, #tpu.memory_space<vmem>>, vector<2x16x32xf32>
    tpu.vector_store %arg6[%c0_35, %c0_36, %c0_37], %44 {strides = array<i32>} : memref<2x16x32xf32, #tpu.memory_space<vmem>>, vector<2x16x32xf32>,
    return
  }
  func.func @transform_0(%arg0: i32) -> (i32, i32, i32) {
    %c0_i32 = arith.constant 0 : i32
    %c0_i32_0 = arith.constant 0 : i32
    %c0_i32_1 = arith.constant 0 : i32
    return %arg0, %c0_i32, %c0_i32_0 : i32, i32, i32
  }
  func.func @transform_1(%arg0: i32) -> (i32, i32) {
    %c0_i32 = arith.constant 0 : i32
    %c0_i32_0 = arith.constant 0 : i32
    %c0_i32_1 = arith.constant 0 : i32
    return %c0_i32, %c0_i32_0 : i32, i32
  }
  func.func @transform_2(%arg0: i32) -> (i32, i32) {
    %c0_i32 = arith.constant 0 : i32
    %c0_i32_0 = arith.constant 0 : i32
    %c0_i32_1 = arith.constant 0 : i32
    return %c0_i32, %c0_i32_0 : i32, i32
  }
  func.func @transform_3(%arg0: i32) -> (i32, i32) {
    %c0_i32 = arith.constant 0 : i32
    %c0_i32_0 = arith.constant 0 : i32
    %c0_i32_1 = arith.constant 0 : i32
    return %c0_i32, %c0_i32_0 : i32, i32
  }
  func.func @transform_4(%arg0: i32) -> (i32, i32) {
    %c0_i32 = arith.constant 0 : i32
    %c0_i32_0 = arith.constant 0 : i32
    %c0_i32_1 = arith.constant 0 : i32
    return %c0_i32, %c0_i32_0 : i32, i32
  }
  func.func @transform_5(%arg0: i32) -> (i32, i32, i32) {
    %c0_i32 = arith.constant 0 : i32
    %c0_i32_0 = arith.constant 0 : i32
    %c0_i32_1 = arith.constant 0 : i32
    return %arg0, %c0_i32, %c0_i32_0 : i32, i32, i32
  }
}

</mosaic_0001>

<bundles_post_ra>
// kernel: tpu_custom_call.1
= control target key start
LH: loop header
LB: loop body
LE: loop exit
PB: predicated region body
PF: predicated region fallthrough
CT: control target
= control target key end

     0   :  { %10 = vsyncpa [#allocation4], 0  ;;  %s1434_s0 = inlined_call_operand.vmem [shape: f32[4,16,32], index: 0, kind: input, shape index: {}]   ;;  %s1435_s1 = inlined_call_operand.vmem [shape: bf16[160,32], index: 1, kind: input, shape index: {}]   ;;  %s1436_s2 = inlined_call_operand.vmem [shape: f32[1,32], index: 2, kind: input, shape index: {}]   ;;  %s1437_s3 = inlined_call_operand.vmem [shape: bf16[160,32], index: 3, kind: input, shape index: {}]   ;;  %s1438_s4 = inlined_call_operand.vmem [shape: f32[1,32], index: 4, kind: input, shape index: {}]   ;;  %s1439_s5 = inlined_call_operand.hbm [shape: f32[4,16,32], index: 5, kind: output, shape index: {}]  }
   0x1   :  { %12 = vsyncpa [#allocation4 + $0x1], 0  ;;  %s1163_s18 = smov 0   ;;  %s1165_s19 = smov 0  }
   0x2   :  { %s1167_s20 = smov 0   ;;  %s1169_s21 = smov 0  }
   0x3 LB: > { %s1184_s22 = sadd.s32 4294967295, %s1125_s21   ;;  %s875_s23 = sadd.s32 4294967294, %s1125_s21   ;;  %s1125_s21 = sphi %s1169_s21, %s1447_s21   ;;  %s1121_s20 = sphi %s1167_s20, %s1446_s20   ;;  %s1117_s19 = sphi %s1165_s19, %s1445_s19   ;;  %s1113_s18 = sphi %s1163_s18, %s1444_s18  }
   0x4   : > { %s1188_s24 = sadd.s32 1, %s1125_s21   ;;  %s135_s25 = sadd.s32 1, %s1121_s20 }
   0x5   : > { %s132_s26 = ssub.s32 %s1125_s21, %s1188_s24  ;;  %p145_p0 = scmp.ne.s32.totalorder %s1121_s20, %s1117_s19 }
   0x6   : > { %p133_p1 = scmp.eq.s32.totalorder %s132_s26, 0  ;;  %p146_p2 = scmp.eq.s32.totalorder %s1184_s22, 1 }
   0x7   : > { %p151_p3 = scmp.ne.s32.totalorder %s1117_s19, %s1113_s18  ;;  %p152_p4 = scmp.eq.s32.totalorder %s875_s23, 1 }
   0x8   : > { %s1199_s27 = scalar_select %p133_p1, %s1121_s20, %s135_s25  }
   0x9   : > { %p1201_p5 = por %p146_p2, %p145_p0  ;;  %p1205_p6 = por %p152_p4, %p151_p3 }
   0xa   : > { %p878_p7 = scmp.ge.s32.totalorder %s1125_s21, 1  ;;  %p192_p8 = scmp.lt.s32.totalorder %s1125_s21, 3 }
   0xc   : > { %p193_p9 = pnand %p878_p7, %p192_p8 }
   0xd   : > { %s880_s30 = sshll.u32 (!%p193_p9), %s1184_s22, 1  ;;  %s1128_s8 = smov (!%p193_p9), 32  }
   0xe   : > { %196 = sbr.rel (%p193_p9) target bundleno = 623 (0x26f), region = 40  ;;  %p222_p10 = scmp.lt.s32.totalorder (!%p193_p9), %s880_s30, 3 }
   0xf   : > { %s1130_s10 = smov (!%p193_p9), 96   ;;  %s218_s12 = sand.u32 (!%p193_p9), 1, %s1117_s19  }
  0x10   : > { %s879_s13 = sshll.u32 (!%p193_p9), %s218_s12, 5  ;;  %s1015_s15 = sshll.u32 (!%p193_p9), %s1184_s22, 5 }
  0x11   : > { %s220_s14 = scalar_lea.vmem (!%p193_p9), [#allocation3], %s879_s13  ;;  %s797_s22 = scalar_lea.sflag (!%p193_p9), [#allocation4], %s218_s12 }
  0x12   : > { %s810_s23 = sshll.u32 (!%p193_p9), %s220_s14, 4  ;;  %s811_s23 = int_to_ptr.vmem [resolvable:$true] %s810_s23 }
  0x13   : > { %vm230_vm0 = vcmask 253952   ;;  %vm233_vm1 = vcmask 254977   ;;  %v1127_v0 = vmov 0   ;;  %s1449_s30 = smov (!%p222_p10, %s880_s30), 3  ;;  %vm252_vm2 = vcmask 1040384   ;;  %v999_v16 = vld [vmem:[%s1435_s1 + $0x38] sm:$0xff] }
  0x14   : > { %231 = vst.msk [vmem:[#allocation2] sm:$0x1] %vm230_vm0, %v1127_v0  ;;  %s989_s6 = sshll.u32 %s1449_s30, 4  ;;  %vm253_vm3 = vcmask 1044484   ;;  %vm271_vm4 = vcmask 257025   ;;  %vm273_vm6 = vcmask 257024   ;;  %478 = vmatpush.bf16.msra.mxu0 %v999_v16 }
  0x15   : > { %234 = vst.msk [vmem:[#allocation2 + $0x8] sm:$0x2] %vm233_vm1, %v1127_v0  ;;  %s226_s9 = scalar_lea.vmem %s1434_s0, %s989_s6  ;;  %vm1232_vm5 = vmor %vm252_vm2, %vm253_vm3  ;;  %v1001_v19 = vld [vmem:[%s1435_s1 + $0x48] sm:$0xff]  ;;  %v998_v23 = vld [vmem:[%s1435_s1 + $0x30] sm:$0xff]  ;;  %vm301_vm7 = vsmask.f32 7424 }
  0x16   : > { %232 = vst.msk [vmem:[#allocation2 + $0xc] sm:$0x1] %vm230_vm0, %v1127_v0  ;;  %v1217_v1 = vld [vmem:[%s226_s9] sm:$0xff]  ;;  %v1219_v2 = vld [vmem:[%s226_s9 + $0x8] sm:$0xff]  ;;  %v1221_v3 = vld [vmem:[%s226_s9 + $0x10] sm:$0xff]  ;;  %503 = vmatpush.bf16.msra.mxu1 %v1001_v19  ;;  %vm330_vm9 = vcmask 1046528  }
  0x17   : > { %235 = vst.msk [vmem:[#allocation2 + $0x14] sm:$0x2] %vm233_vm1, %v1127_v0  ;;  %v240_v4 = vmax.f32 %v1217_v1, 0.0  ;;  %v241_v5 = vmax.f32 %v1219_v2, 0.0  ;;  %v1225_v6 = vld [vmem:[%s226_s9 + $0x18] sm:$0xff]  ;;  %v242_v7 = vmax.f32 %v1221_v3, 0.0 }
  0x18   : > { %v243_v8 = vmax.f32 %v1225_v6, 0.0  ;;  %479 = vmatpush.bf16.msra.mxu0 %v998_v23  ;;  %v997_v27 = vld [vmem:[%s1435_s1 + $0x28] sm:$0xff]  ;;  %v996_v28 = vld [vmem:[%s1435_s1 + $0x20] sm:$0xff]  ;;  %v995_v37 = vld [vmem:[%s1435_s1 + $0x18] sm:$0xff]  ;;  %vm341_vm8 = vsmask.f32 6400 }
  0x19   : > { %v244_v9 = vpack.c.bf16 %v240_v4, %v240_v4  ;;  %v245_v10 = vpack.c.bf16 %v241_v5, %v241_v5  ;;  %v246_v11 = vpack.c.bf16 %v242_v7, %v242_v7  ;;  %v994_v51 = vld [vmem:[%s1435_s1 + $0x10] sm:$0xff]  ;;  %s1129_s9 = smov 64   ;;  %v993_v16 = vld [vmem:[%s1435_s1 + $0x8] sm:$0xff]  ;;  %vm364_vm10 = vcmask 1045504   ;;  %s1083_s6 = scalar_lea.hbm %s1439_s5, 64 }
  0x1a   : > { %v247_v12 = vpack.c.bf16 %v243_v8, %v243_v8  ;;  %vm371_vm11 = vcmask 261120   ;;  %vm376_vm12 = vcmask 523264   ;;  %vm381_vm13 = vcmask 785408  }
  0x1b   : > { %v255_v13 = vrot.slane %v244_v9, 7  ;;  %v257_v14 = vrot.slane %v245_v10, 7  ;;  %v260_v15 = vrot.slane %v246_v11, 7 }
  0x1c   : > { %v262_v18 = vrot.slane %v247_v12, 7  ;;  %480 = vmatpush.bf16.msra.mxu0 %v997_v27 }
  0x1d   : > { %v256_v20 = vrot.slane %v255_v13, 4  ;;  %v259_v21 = vrot.slane %v257_v14, 4  ;;  %272 = vst.msk [vmem:[#allocation2] sm:$0xe] %vm271_vm4, %v255_v13  ;;  %v261_v22 = vrot.slane %v260_v15, 4 }
  0x1e   : > { %v264_v24 = vrot.slane %v262_v18, 4  ;;  %276 = vst.msk [vmem:[#allocation2 + $0xc] sm:$0xe] %vm271_vm4, %v260_v15  ;;  %v1000_v15 = vld [vmem:[%s1435_s1 + $0x40] sm:$0xff] }
  0x1f   : > { %v258_v25 = vsel %vm1232_vm5, %v256_v20, %v257_v14  ;;  %275 = vst.msk [vmem:[#allocation2 + $0x8] sm:$0x1] %vm230_vm0, %v259_v21  ;;  %v263_v26 = vsel %vm1232_vm5, %v261_v22, %v262_v18  ;;  %504 = vmatpush.bf16.msra.mxu1 %v1000_v15  ;;  %v992_v21 = vld [vmem:[%s1435_s1] sm:$0xff] }
  0x20   : > { %274 = vst.msk [vmem:[#allocation2 + $0x4] sm:$0xf] %vm273_vm6, %v258_v25  ;;  %481 = vmatpush.bf16.msra.mxu0 %v996_v28 }
  0x21   : > { %277 = vst.msk [vmem:[#allocation2 + $0x10] sm:$0xf] %vm273_vm6, %v263_v26 }
  0x22   : > { %278 = vst.msk [vmem:[#allocation2 + $0x14] sm:$0x1] %vm230_vm0, %v264_v24 }
  0x24   : > { %482 = vmatpush.bf16.msra.mxu0 %v995_v37 }
  0x26   : > { %v281_v29 = vld [vmem:[#allocation2 + $0x8] sm:$0x3] }
  0x27   : > { %v1258_v30 = vld [vmem:[#allocation2] sm:$0xff]  ;;  %v297_v31 = vunpack.c.l.b16 %v281_v29 }
  0x28   : > { %v1260_v32 = vld [vmem:[#allocation2 + $0xc] sm:$0xff]  ;;  %v303_v34 = vshrl.u32 %v1258_v30, 16  ;;  %v305_v35 = vshll.u32 %v1258_v30, 16  ;;  %v331_v63 = vrot.slane %v1258_v30, 1  ;;  %483 = vmatpush.bf16.msra.mxu0 %v994_v51  ;;  %v365_v18 = vrot.slane %v1258_v30, 2 }
  0x29   : > { %v1262_v33 = vpack.c.b16 %v297_v31, %v297_v31  ;;  %v284_v36 = vld [vmem:[#allocation2 + $0x14] sm:$0x3]  ;;  %v315_v45 = vshrl.u32 %v1260_v32, 16  ;;  %v317_v46 = vshll.u32 %v1260_v32, 16  ;;  %v334_v50 = vrot.slane %v1260_v32, 1 }
  0x2a   : > { %v298_v38 = vunpack.c.l.b16 %v284_v36  ;;  %v307_v39 = vrot.slane %v305_v35, 1  ;;  %v342_v41 = vrot.slane %v303_v34, 1  ;;  %v343_v42 = vrot.slane %v305_v35, 2 }
  0x2b   : > { %v310_v40 = vshll.u32 %v1262_v33, 16  ;;  %v345_v43 = vshrl.u32 %v1262_v33, 16  ;;  %v351_v57 = vrot.slane %v315_v45, 1  ;;  %v352_v58 = vrot.slane %v317_v46, 2 }
  0x2c   : > { %v300_v44 = vpack.c.b16 %v298_v38, %v298_v38  ;;  %v308_v47 = vor.u32 %v307_v39, %v303_v34  ;;  %v344_v52 = vor.u32 %v343_v42, %v342_v41  ;;  %v319_v60 = vrot.slane %v317_v46, 1  ;;  %484 = vmatpush.bf16.msra.mxu0 %v993_v16 }
  0x2d   : > { %v312_v48 = vrot.slane %v310_v40, 1  ;;  %v348_v49 = vrot.slane %v310_v40, 2  ;;  %v347_v53 = vrot.slane %v345_v43, 1  ;;  %v332_v0 = vrot.slane %v1262_v33, 1  ;;  %v1061_v40 = vld [vmem:[%s1436_s2] ss:$0 sm:$0xff] }
  0x2e   : > { %v322_v54 = vshll.u32 %v300_v44, 16  ;;  %v335_v56 = vrot.slane %v300_v44, 1  ;;  %v354_v61 = vshrl.u32 %v300_v44, 16  ;;  %v353_v8 = vor.u32 %v352_v58, %v351_v57 }
  0x2f   : > { %v313_v55 = vsel %vm301_vm7, %v308_v47, %v312_v48  ;;  %v349_v59 = vor.u32 %v348_v49, %v347_v53  ;;  %v320_v9 = vor.u32 %v319_v60, %v315_v45  ;;  %v333_v12 = vsel %vm330_vm9, %v331_v63, %v332_v0 }
  0x30   : > { %326 = vrot.lane.b32.xlu0 %v313_v55, %s1128_s8  ;;  %v357_v62 = vrot.slane %v322_v54, 2  ;;  %v336_v4 = vsel %vm330_vm9, %v334_v50, %v335_v56  ;;  %v356_v7 = vrot.slane %v354_v61, 1  ;;  %v324_v10 = vrot.slane %v322_v54, 1  ;;  %485 = vmatpush.bf16.msra.mxu0 %v992_v21 }
  0x31   : > { %v350_v5 = vsel %vm341_vm8, %v344_v52, %v349_v59  ;;  %339 = vrot.lane.b32.xlu2 %v336_v4, %s1129_s9  ;;  %v366_v19 = vrot.slane %v1262_v33, 2  ;;  %v368_v22 = vrot.slane %v1260_v32, 2  ;;  %v369_v23 = vrot.slane %v300_v44, 2 }
  0x32   : > { %360 = vrot.lane.b32.xlu1 %v350_v5, %s1130_s10  ;;  %v358_v11 = vor.u32 %v357_v62, %v356_v7  ;;  %v325_v14 = vsel %vm301_vm7, %v320_v9, %v324_v10  ;;  %v1011_v5 = vld [vmem:[%s1437_s3 + $0x38] sm:$0xff]  ;;  %v1010_v10 = vld [vmem:[%s1437_s3 + $0x30] sm:$0xff] }
  0x33   : > { %v367_v20 = vsel %vm364_vm10, %v365_v18, %v366_v19  ;;  %v370_v24 = vsel %vm364_vm10, %v368_v22, %v369_v23  ;;  %742 = vmatpush.bf16.msra.mxu2 %v1011_v5  ;;  %v1009_v5 = vld [vmem:[%s1437_s3 + $0x28] sm:$0xff] }
  0x34   : > { %v359_v13 = vsel %vm341_vm8, %v353_v8, %v358_v11  ;;  %931 = vmatmul.msk.bf16.vlgmr.msra.gmra.mxu1 %vm371_vm11, %v367_v20 }
  0x37   : > { %743 = vmatpush.bf16.msra.mxu2 %v1010_v10  ;;  %v1006_v10 = vld [vmem:[%s1437_s3 + $0x10] sm:$0xff] }
  0x38   : > { %337 = vrot.lane.b32.xlu0 %v333_v12, %s1129_s9 }
  0x39   : > { %362 = vrot.lane.b32.xlu2 %v359_v13, %s1130_s10 }
  0x3a   : > { %328 = vrot.lane.b32.xlu1 %v325_v14, %s1128_s8 }
  0x3b   : > { %744 = vmatpush.bf16.msra.mxu2 %v1009_v5 }
  0x44   : > { %932 = vmatmul.msk.bf16.gmra.mxu1 %vm371_vm11, %v370_v24 }
  0x8b   : > { %v340_v33 = vpop.permute.xlu2 %339 }
  0x93   : > { %v363_v36 = vpop.permute.xlu2 %362 }
  0xa2   : > { %v327_v25 = vpop.permute.xlu0 %326 }
  0xa3   : > { %v373_v27 = vsel %vm371_vm11, %v1258_v30, %v327_v25  ;;  %v1013_v30 = vld [vmem:[%s1437_s3 + $0x48] sm:$0xff] }
  0xa4   : > { %v361_v26 = vpop.permute.xlu1 %360  ;;  %767 = vmatpush.bf16.msra.mxu3 %v1013_v30 }
  0xaa   : > { %v338_v28 = vpop.permute.xlu0 %337 }
  0xab   : > { %v378_v29 = vsel %vm376_vm12, %v373_v27, %v338_v28 }
  0xac   : > { %v383_v31 = vsel %vm381_vm13, %v378_v29, %v361_v26  ;;  %v329_v34 = vpop.permute.xlu1 %328 }
  0xad   : > { %486 = vmatmul.bf16.vlgmr.msra.gmra.mxu0 %v383_v31  ;;  %v375_v35 = vsel %vm371_vm11, %v1260_v32, %v329_v34  ;;  %v1012_v32 = vld [vmem:[%s1437_s3 + $0x40] sm:$0xff] }
  0xae   : > { %v380_v37 = vsel %vm376_vm12, %v375_v35, %v340_v33  ;;  %768 = vmatpush.bf16.msra.mxu3 %v1012_v32 }
  0xaf   : > { %v386_v38 = vsel %vm381_vm13, %v380_v37, %v363_v36 }
  0xb1   : > { %v506_v39 = vpop.f32.mrf.mxu1 }
  0xb9   : > { %v508_v45 = vpop.f32.mrf.mxu1 }
  0xbd   : > { %491 = vmatmul.bf16.gmra.mxu0 %v386_v38 }
  0xc1   : > { %v511_v53 = vpop.f32.mrf.mxu1 }
  0xc9   : > { %v513_v7 = vpop.f32.mrf.mxu1 }
 0x12a   : > { %v487_v41 = vpop.f32.mrf.mxu0 }
 0x12b   : > { %v488_v42 = vadd.f32 %v1061_v40, %v487_v41 }
 0x12d   : > { %v507_v43 = vadd.f32 %v506_v39, %v488_v42 }
 0x12f   : > { %v516_v44 = vmax.f32 %v507_v43, 0.0 }
 0x131   : > { %v520_v46 = vpack.c.bf16 %v516_v44, %v516_v44 }
 0x132   : > { %v489_v47 = vpop.f32.mrf.mxu0 }
 0x133   : > { %v528_v48 = vrot.slane %v520_v46, 7  ;;  %v490_v49 = vadd.f32 %v1061_v40, %v489_v47 }
 0x135   : > { %544 = vst.msk [vmem:[#allocation2] sm:$0xe] %vm271_vm4, %v528_v48  ;;  %v509_v50 = vadd.f32 %v508_v45, %v490_v49  ;;  %v529_v55 = vrot.slane %v528_v48, 4 }
 0x137   : > { %v517_v51 = vmax.f32 %v509_v50, 0.0 }
 0x139   : > { %v521_v52 = vpack.c.bf16 %v517_v51, %v517_v51 }
 0x13a   : > { %v492_v54 = vpop.f32.mrf.mxu0 }
 0x13b   : > { %v530_v56 = vrot.slane %v521_v52, 7  ;;  %v493_v57 = vadd.f32 %v1061_v40, %v492_v54 }
 0x13d   : > { %v531_v58 = vsel %vm1232_vm5, %v529_v55, %v530_v56  ;;  %v532_v59 = vrot.slane %v530_v56, 4  ;;  %v512_v60 = vadd.f32 %v511_v53, %v493_v57 }
 0x13e   : > { %545 = vst.msk [vmem:[#allocation2 + $0x4] sm:$0xf] %vm273_vm6, %v531_v58 }
 0x13f   : > { %546 = vst.msk [vmem:[#allocation2 + $0x8] sm:$0x1] %vm230_vm0, %v532_v59  ;;  %v518_v61 = vmax.f32 %v512_v60, 0.0 }
 0x141   : > { %v522_v62 = vpack.c.bf16 %v518_v61, %v518_v61 }
 0x142   : > { %v494_v63 = vpop.f32.mrf.mxu0 }
 0x143   : > { %v533_v0 = vrot.slane %v522_v62, 7  ;;  %v495_v4 = vadd.f32 %v1061_v40, %v494_v63 }
 0x145   : > { %547 = vst.msk [vmem:[#allocation2 + $0xc] sm:$0xe] %vm271_vm4, %v533_v0  ;;  %v514_v8 = vadd.f32 %v513_v7, %v495_v4  ;;  %v1333_v9 = vld [vmem:[#allocation2] sm:$0xff]  ;;  %v534_v19 = vrot.slane %v533_v0, 4 }
 0x146   : > { %v552_v11 = vld [vmem:[#allocation2 + $0x8] sm:$0x3]  ;;  %v573_v14 = vshrl.u32 %v1333_v9, 16  ;;  %v575_v15 = vshll.u32 %v1333_v9, 16  ;;  %v632_v20 = vrot.slane %v1333_v9, 2  ;;  %v600_v21 = vrot.slane %v1333_v9, 1 }
 0x147   : > { %v519_v12 = vmax.f32 %v514_v8, 0.0  ;;  %v568_v13 = vunpack.c.l.b16 %v552_v11  ;;  %v1008_v7 = vld [vmem:[%s1437_s3 + $0x20] sm:$0xff]  ;;  %v1007_v8 = vld [vmem:[%s1437_s3 + $0x18] sm:$0xff]  ;;  %v1005_v11 = vld [vmem:[%s1437_s3 + $0x8] sm:$0xff] }
 0x148   : > { %v577_v22 = vrot.slane %v575_v15, 1  ;;  %v610_v27 = vrot.slane %v573_v14, 1  ;;  %v611_v28 = vrot.slane %v575_v15, 2  ;;  %745 = vmatpush.bf16.msra.mxu2 %v1008_v7 }
 0x149   : > { %v523_v16 = vpack.c.bf16 %v519_v12, %v519_v12  ;;  %v570_v18 = vpack.c.b16 %v568_v13, %v568_v13  ;;  %v1004_v12 = vld [vmem:[%s1437_s3] sm:$0xff] }
 0x14a   : > { %v578_v36 = vor.u32 %v577_v22, %v573_v14  ;;  %v612_v39 = vor.u32 %v611_v28, %v610_v27 }
 0x14b   : > { %v535_v23 = vrot.slane %v523_v16, 7  ;;  %v633_v24 = vrot.slane %v570_v18, 2  ;;  %v601_v25 = vrot.slane %v570_v18, 1  ;;  %v580_v26 = vshll.u32 %v570_v18, 16 }
 0x14c   : > { %v613_v29 = vshrl.u32 %v570_v18, 16  ;;  %746 = vmatpush.bf16.msra.mxu2 %v1007_v8 }
 0x14d   : > { %v536_v31 = vsel %vm1232_vm5, %v534_v19, %v535_v23  ;;  %v537_v33 = vrot.slane %v535_v23, 4  ;;  %v634_v34 = vsel %vm364_vm10, %v632_v20, %v633_v24  ;;  %v602_v35 = vsel %vm330_vm9, %v600_v21, %v601_v25 }
 0x14e   : > { %548 = vst.msk [vmem:[#allocation2 + $0x10] sm:$0xf] %vm273_vm6, %v536_v31  ;;  %981 = vmatmul.msk.bf16.vlgmr.msra.gmra.mxu3 %vm371_vm11, %v634_v34  ;;  %606 = vrot.lane.b32.xlu1 %v602_v35, %s1129_s9  ;;  %v582_v37 = vrot.slane %v580_v26, 1  ;;  %v615_v38 = vrot.slane %v613_v29, 1  ;;  %v616_v30 = vrot.slane %v580_v26, 2 }
 0x14f   : > { %549 = vst.msk [vmem:[#allocation2 + $0x14] sm:$0x1] %vm230_vm0, %v537_v33 }
 0x150   : > { %v583_v17 = vsel %vm301_vm7, %v578_v36, %v582_v37  ;;  %v617_v40 = vor.u32 %v616_v30, %v615_v38  ;;  %747 = vmatpush.bf16.msra.mxu2 %v1006_v10 }
 0x151   : > { %596 = vrot.lane.b32.xlu0 %v583_v17, %s1128_s8 }
 0x152   : > { %v618_v32 = vsel %vm341_vm8, %v612_v39, %v617_v40 }
 0x153   : > { %628 = vrot.lane.b32.xlu2 %v618_v32, %s1130_s10 }
 0x154   : > { %748 = vmatpush.bf16.msra.mxu2 %v1005_v11 }
 0x155   : > { %v1003_v41 = vld [vmem:[#allocation2 + $0xc] sm:$0xff] }
 0x156   : > { %v555_v42 = vld [vmem:[#allocation2 + $0x14] sm:$0x3]  ;;  %v585_v44 = vshrl.u32 %v1003_v41, 16  ;;  %v587_v45 = vshll.u32 %v1003_v41, 16  ;;  %v635_v47 = vrot.slane %v1003_v41, 2  ;;  %v603_v48 = vrot.slane %v1003_v41, 1 }
 0x157   : > { %v569_v43 = vunpack.c.l.b16 %v555_v42 }
 0x158   : > { %v589_v49 = vrot.slane %v587_v45, 1  ;;  %v619_v55 = vrot.slane %v585_v44, 1  ;;  %v620_v56 = vrot.slane %v587_v45, 2  ;;  %749 = vmatpush.bf16.msra.mxu2 %v1004_v12 }
 0x159   : > { %v571_v46 = vpack.c.b16 %v569_v43, %v569_v43 }
 0x15a   : > { %v590_v54 = vor.u32 %v589_v49, %v585_v44  ;;  %v621_v63 = vor.u32 %v620_v56, %v619_v55 }
 0x15b   : > { %v636_v50 = vrot.slane %v571_v46, 2  ;;  %v604_v51 = vrot.slane %v571_v46, 1  ;;  %v592_v52 = vshll.u32 %v571_v46, 16  ;;  %v622_v53 = vshrl.u32 %v571_v46, 16 }
 0x15d   : > { %v637_v57 = vsel %vm364_vm10, %v635_v47, %v636_v50  ;;  %v605_v58 = vsel %vm330_vm9, %v603_v48, %v604_v51  ;;  %v594_v59 = vrot.slane %v592_v52, 1  ;;  %v624_v60 = vrot.slane %v622_v53, 1 }
 0x15e   : > { %982 = vmatmul.msk.bf16.gmra.mxu3 %vm371_vm11, %v637_v57  ;;  %608 = vrot.lane.b32.xlu1 %v605_v58, %s1129_s9  ;;  %v625_v61 = vrot.slane %v592_v52, 2  ;;  %s809_s9 = scalar_lea.hbm %s1439_s5, %s1015_s15 }
 0x15f   : > { %v595_v62 = vsel %vm301_vm7, %v590_v54, %v594_v59 }
 0x160   : > { %598 = vrot.lane.b32.xlu0 %v595_v62, %s1128_s8  ;;  %v626_v0 = vor.u32 %v625_v61, %v624_v60  ;;  %s812_s8 = sshll.u32 %s809_s9, 4  ;;  %s813_s8 = int_to_ptr.hbm [resolvable:$true] %s812_s8 }
 0x161   : > { %s1077_s25 = sshra.s32 %s813_s8, 4  ;;  %s1078_s25 = int_to_ptr.hbm [resolvable:$true] %s1077_s25 }
 0x162   : > { %v627_v4 = vsel %vm341_vm8, %v621_v63, %v626_v0  ;;  %p1084_p0 = scmp.lt.s32.totalorder %s1078_s25, %s1439_s5 }
 0x163   : > { %630 = vrot.lane.b32.xlu2 %v627_v4, %s1130_s10  ;;  %s1079_s10 = scalar_lea.hbm %s1078_s25, 32 }
 0x164   : > { %p1080_p11 = scmp.ne.s32.totalorder %s1078_s25, %s1079_s10  ;;  %p1085_p1 = scmp.lt.s32.totalorder %s1083_s6, %s1079_s10 }
 0x166   : > { %p1081_p12 = pnand %p1080_p11, %p1201_p5  ;;  %p1086_p2 = por %p1085_p1, %p1084_p0 }
 0x168   : > { %p1082_p13 = pneg %p1081_p12 }
 0x16a   : > { %p1087_p3 = pnand %p1086_p2, %p1082_p13 }
 0x1ad   : > { %v629_v16 = vpop.permute.xlu2 %628 }
 0x1bd   : > { %v631_v23 = vpop.permute.xlu2 %630 }
 0x1c0   : > { %v607_v14 = vpop.permute.xlu1 %606 }
 0x1c3   : > { %v597_v13 = vpop.permute.xlu0 %596 }
 0x1c4   : > { %v639_v15 = vsel %vm371_vm11, %v1333_v9, %v597_v13  ;;  %v1062_v9 = vld [vmem:[%s1438_s4] ss:$0 sm:$0xff] }
 0x1c5   : > { %v643_v18 = vsel %vm376_vm12, %v639_v15, %v607_v14 }
 0x1c6   : > { %v647_v19 = vsel %vm381_vm13, %v643_v18, %v629_v16 }
 0x1c7   : > { %750 = vmatmul.bf16.vlgmr.msra.gmra.mxu2 %v647_v19 }
 0x1d0   : > { %v609_v21 = vpop.permute.xlu1 %608 }
 0x1d1   : > { %v770_v26 = vpop.f32.mrf.mxu3 }
 0x1d2   : > { %v599_v20 = vpop.permute.xlu0 %598 }
 0x1d3   : > { %v641_v22 = vsel %vm371_vm11, %v1003_v41, %v599_v20 }
 0x1d4   : > { %v645_v24 = vsel %vm376_vm12, %v641_v22, %v609_v21 }
 0x1d5   : > { %v650_v25 = vsel %vm381_vm13, %v645_v24, %v631_v23 }
 0x1d7   : > { %755 = vmatmul.bf16.gmra.mxu2 %v650_v25 }
 0x1d9   : > { %v772_v33 = vpop.f32.mrf.mxu3 }
 0x1e1   : > { %v775_v17 = vpop.f32.mrf.mxu3 }
 0x1e9   : > { %v777_v43 = vpop.f32.mrf.mxu3 }
 0x24a   : > { %v751_v27 = vpop.f32.mrf.mxu2 }
 0x24b   : > { %v752_v28 = vadd.f32 %v1062_v9, %v751_v27 }
 0x24d   : > { %v771_v29 = vadd.f32 %v770_v26, %v752_v28 }
 0x24f   : > { %v784_v31 = vmul.f32 0.3, %v771_v29 }
 0x251   : > { %v788_v34 = vadd.f32 %v784_v31, %v1217_v1 }
 0x252   : > { %v753_v35 = vpop.f32.mrf.mxu2 }
 0x253   : > { %792 = vst.msk [vmem:[%s220_s14] sm:$0xff] %vm371_vm11, %v788_v34  ;;  %v754_v36 = vadd.f32 %v1062_v9, %v753_v35 }
 0x255   : > { %v773_v37 = vadd.f32 %v772_v33, %v754_v36 }
 0x257   : > { %v785_v38 = vmul.f32 0.3, %v773_v37 }
 0x259   : > { %v789_v30 = vadd.f32 %v785_v38, %v1219_v2 }
 0x25a   : > { %v756_v39 = vpop.f32.mrf.mxu2 }
 0x25b   : > { %793 = vst.msk [vmem:[%s220_s14 + $0x8] sm:$0xff] %vm371_vm11, %v789_v30  ;;  %v757_v40 = vadd.f32 %v1062_v9, %v756_v39 }
 0x25d   : > { %v776_v32 = vadd.f32 %v775_v17, %v757_v40 }
 0x25f   : > { %v786_v41 = vmul.f32 0.3, %v776_v32 }
 0x261   : > { %v790_v1 = vadd.f32 %v786_v41, %v1221_v3 }
 0x262   : > { %v758_v42 = vpop.f32.mrf.mxu2 }
 0x263   : > { %794 = vst.msk [vmem:[%s220_s14 + $0x10] sm:$0xff] %vm371_vm11, %v790_v1  ;;  %v759_v2 = vadd.f32 %v1062_v9, %v758_v42 }
 0x265   : > { %v778_v44 = vadd.f32 %v777_v43, %v759_v2 }
 0x267   : > { %v787_v45 = vmul.f32 0.3, %v778_v44 }
 0x269   : > { %v791_v46 = vadd.f32 %v787_v45, %v1225_v6 }
 0x26b   : > { %795 = vst.msk [vmem:[%s220_s14 + $0x18] sm:$0xff] %vm371_vm11, %v791_v46 }
 0x26c   : > { %1090 = shalt.err (!%p1087_p3)
}
 0x26d   : > { %s1131_s12 = smov 128   ;;  %s1132_s13 = smov 8  }
 0x26e   : > { %1016 = dma.vmem_to_hbm [thread:$0]  (%p1201_p5), %s811_s23, 512, %s813_s8, %s797_s22, %s1131_s12, %s1131_s12, %s1132_s13  }
 0x26f PF: > { %p1022_p4 = scmp.ge.s32.totalorder %s1125_s21, 2  ;;  %s827_s14 = sand.u32 1, %s1113_s18  }
 0x270   : > { %s828_s15 = scalar_lea.sflag [#allocation4], %s827_s14 }
 0x271   : > { %p1019_p7 = pnand %p1022_p4, %p1205_p6 }
 0x273   : > { %p1020_p8 = pneg %p1019_p7 }
 0x275   : > { %1108 = dma.done.wait (%p1020_p8), %s828_s15, 512  }
 0x276   : > { %1110 = vsyncadd (%p1020_p8), %s828_s15, 4294966784  ;;  %p15_p9 = scmp.ge.s32.totalorder %s1188_s24, 4   ;;  %s1444_s18 = smov %s1117_s19 }
 0x277   : > { %s1445_s19 = smov %s1121_s20  ;;  %s1446_s20 = smov %s1199_s27 }
 0x278   : > { %s1447_s21 = smov %s1188_s24  ;;  %17 = sbr.rel (!%p15_p9) target bundleno = 3 (0x3), region = 75 }
 0x27d   :  { %834 = vsyncpa [#allocation4], 1 }
 0x27e   :  { %836 = vsyncpa [#allocation4 + $0x1], 1 }

</bundles_post_ra>
